<compile_context>
chip_gen: v6e
topology: v6e:2x2x1
jax: 0.10.0
libtpu: 0.0.40
codegen_flags: <defaults>
</compile_context>

<pallas_src>
import jax
import jax.numpy as jnp
from jax.experimental import pallas as pl
from jax.experimental.pallas import tpu as pltpu

IN_F = 28 * 28       # 784 (do NOT pad K: pure DMA loss in a mem-bound regime)
HID = 200
HID_PAD = 256        # hidden dim padded to MXU-friendly 256
OUT = 10
OUT_PAD = 128        # lane-dense output block (sliced back to 10 outside)
TB_MAX = 2048        # batch tile cap: multiple of 8 sublanes, ~12 MiB VMEM w/ bf16 x
MIN_GRID_STEPS = 4   # keep >=4 grid steps so both v7x TensorCores get work


def _mlp_kernel(x_ref, w1_ref, b1_ref, w2_ref, b2_ref, w3_ref, b3_ref, o_ref):
    # fc1 + relu : bf16 MXU operands, f32 accumulation; bias/ReLU on VPU in f32,
    # then cast back to bf16 so the staged intermediate is half-width.
    h1 = jnp.dot(x_ref[...], w1_ref[...], preferred_element_type=jnp.float32)
    h1 = jnp.maximum(h1 + b1_ref[...], 0.0).astype(jnp.bfloat16)
    # fc2 + relu
    h2 = jnp.dot(h1, w2_ref[...], preferred_element_type=jnp.float32)
    h2 = jnp.maximum(h2 + b2_ref[...], 0.0).astype(jnp.bfloat16)
    # fc3 (logits, no activation) -- keep f32 logits for accuracy.
    h3 = jnp.dot(h2, w3_ref[...], preferred_element_type=jnp.float32)
    o_ref[...] = (h3 + b3_ref[...]).astype(o_ref.dtype)


def _round_up(v, m):
    return ((v + m - 1) // m) * m


def _pad2(a, rows, cols, dtype):
    return jnp.pad(a, ((0, rows - a.shape[0]), (0, cols - a.shape[1]))).astype(dtype)


def _prep_params(params):
    """Zero-pad to MXU-friendly shapes; weights bf16, biases stay f32."""
    w1, b1, w2, b2, w3, b3 = params
    return (
        _pad2(w1, IN_F, HID_PAD, jnp.bfloat16),
        _pad2(b1, 1, HID_PAD, jnp.float32),
        _pad2(w2, HID_PAD, HID_PAD, jnp.bfloat16),
        _pad2(b2, 1, HID_PAD, jnp.float32),
        _pad2(w3, HID_PAD, OUT_PAD, jnp.bfloat16),
        _pad2(b3, 1, OUT_PAD, jnp.float32),
    )


@jax.jit
def classifier_e_forward(x, params):
    """x: (B, C, H, W) with H == W == 28 -> logits (B*C, 10) (matches view(-1, H*H))."""
    assert x.shape[2] == x.shape[3], "classifier_e assumes square spatial dims"
    hw = x.shape[2] * x.shape[2]          # matches x.view(-1, x.size(2)*x.size(2))
    # Cast to bf16 here: under jit this fuses into the reshape/pad copy, so the
    # kernel's dominant activation DMA moves half the bytes.
    # TODO(synk): on v7x only, an fp8 activation/fc1-weight stream (f32 accumulate)
    # would halve the stream again; kept bf16 everywhere for accuracy/portability.
    x2d = x.reshape(-1, hw).astype(jnp.bfloat16)
    n = x2d.shape[0]

    # Batch tile: multiple of 8 (sublane), capped at TB_MAX, and sized so the
    # grid keeps >= MIN_GRID_STEPS steps when the batch is large enough
    # (otherwise one v7x TensorCore would idle).
    tb = min(TB_MAX, max(8, _round_up(pl.cdiv(n, MIN_GRID_STEPS), 8)))
    n_pad = _round_up(n, tb)
    if n_pad != n:
        x2d = jnp.pad(x2d, ((0, n_pad - n), (0, 0)))

    w1, b1, w2, b2, w3, b3 = _prep_params(params)

    # Weights/biases: whole array as one block, constant index_map -> stays
    # resident in VMEM across all batch-tile grid steps.
    resident = lambda a: pl.BlockSpec(a.shape, lambda i, nd=a.ndim: (0,) * nd)

    flops = 2 * n_pad * (IN_F * HID_PAD + HID_PAD * HID_PAD + HID_PAD * OUT_PAD)
    bytes_accessed = (x2d.size * 2                      # bf16 activation stream
                      + n_pad * OUT_PAD * 4             # f32 logits
                      + (w1.size + w2.size + w3.size) * 2
                      + (b1.size + b2.size + b3.size) * 4)

    out = pl.pallas_call(
        _mlp_kernel,
        out_shape=jax.ShapeDtypeStruct((n_pad, OUT_PAD), jnp.float32),
        grid=(n_pad // tb,),
        in_specs=[
            pl.BlockSpec((tb, IN_F), lambda i: (i, 0)),   # bf16 activation tile
            resident(w1), resident(b1),
            resident(w2), resident(b2),
            resident(w3), resident(b3),
        ],
        out_specs=pl.BlockSpec((tb, OUT_PAD), lambda i: (i, 0)),
        compiler_params=pltpu.CompilerParams(
            dimension_semantics=("parallel",),            # shard over v7x's 2 TCs
            vmem_limit_bytes=32 * 1024 * 1024),           # explicit; ~12 MiB used at tb=2048
        cost_estimate=pl.CostEstimate(
            flops=flops, transcendentals=0, bytes_accessed=bytes_accessed),
    )(x2d, w1, b1, w2, b2, w3, b3)

    return out[:n, :OUT]


def init_params(key):
    """Deterministic init mimicking nn.Linear's U(-1/sqrt(fan_in), 1/sqrt(fan_in)).
    Weights are stored as (in_features, out_features) so the kernel does x @ W."""
    def linear(key, fan_in, fan_out):
        kw, kb = jax.random.split(key)
        bound = 1.0 / jnp.sqrt(fan_in)
        w = jax.random.uniform(kw, (fan_in, fan_out), jnp.float32, -bound, bound)
        b = jax.random.uniform(kb, (1, fan_out), jnp.float32, -bound, bound)
        return w, b

    k1, k2, k3 = jax.random.split(key, 3)
    w1, b1 = linear(k1, IN_F, HID)
    w2, b2 = linear(k2, HID, HID)
    w3, b3 = linear(k3, HID, OUT)
    return (w1, b1, w2, b2, w3, b3)


def _reference(x, params):
    """Pure-JAX reference using the same bf16-operand / f32-accumulate math."""
    w1, b1, w2, b2, w3, b3 = params
    x2d = x.reshape(-1, x.shape[2] * x.shape[2]).astype(jnp.bfloat16)

    def mm(a, w):
        return jnp.dot(a.astype(jnp.bfloat16), w.astype(jnp.bfloat16),
                       preferred_element_type=jnp.float32)

    h1 = jnp.maximum(mm(x2d, w1) + b1, 0.0)
    h2 = jnp.maximum(mm(h1, w2) + b2, 0.0)
    return mm(h2, w3) + b3


if __name__ == "__main__":
    key = jax.random.PRNGKey(0)
    kx, kp = jax.random.split(key)
    # Small batch, MNIST-like input: (B, C, H, W) = (2, 1, 28, 28)
    x = jax.random.normal(kx, (2, 1, 28, 28), jnp.float32)
    params = init_params(kp)

    out = classifier_e_forward(x, params)
    out = jax.block_until_ready(out)

    ref = _reference(x, params)
    assert out.shape == (2, 10), out.shape
    assert jnp.allclose(out, ref, atol=5e-3, rtol=5e-3), "mismatch vs reference"
    print("KERNEL_OK")
</pallas_src>

<mosaic_0001>
module attributes {stable_mosaic.version = 11 : i64} {
  func.func @_mlp_kernel(%arg0: i32, %arg1: memref<8x784xbf16, #tpu.memory_space<vmem>>, %arg2: memref<784x256xbf16, #tpu.memory_space<vmem>>, %arg3: memref<1x256xf32, #tpu.memory_space<vmem>>, %arg4: memref<256x256xbf16, #tpu.memory_space<vmem>>, %arg5: memref<1x256xf32, #tpu.memory_space<vmem>>, %arg6: memref<256x128xbf16, #tpu.memory_space<vmem>>, %arg7: memref<1x128xf32, #tpu.memory_space<vmem>>, %arg8: memref<8x128xf32, #tpu.memory_space<vmem>>) attributes {dimension_semantics = [#tpu.dimension_semantics<parallel>], iteration_bounds = array<i64: 1>, scalar_prefetch = 0 : i64, scratch_operands = 0 : i64, tpu.core_type = #tpu.core_type<tc>, window_params = [{transform_indices = @transform_0, window_bounds = array<i64: 8, 784>}, {pipeline_mode = #tpu.pipeline_mode<synchronous>, transform_indices = @transform_1, window_bounds = array<i64: 784, 256>}, {pipeline_mode = #tpu.pipeline_mode<synchronous>, transform_indices = @transform_2, window_bounds = array<i64: 1, 256>}, {pipeline_mode = #tpu.pipeline_mode<synchronous>, transform_indices = @transform_3, window_bounds = array<i64: 256, 256>}, {pipeline_mode = #tpu.pipeline_mode<synchronous>, transform_indices = @transform_4, window_bounds = array<i64: 1, 256>}, {pipeline_mode = #tpu.pipeline_mode<synchronous>, transform_indices = @transform_5, window_bounds = array<i64: 256, 128>}, {pipeline_mode = #tpu.pipeline_mode<synchronous>, transform_indices = @transform_6, window_bounds = array<i64: 1, 128>}, {transform_indices = @transform_7, window_bounds = array<i64: 8, 128>}]} {
    %c0 = arith.constant 0 : index
    %c0_0 = arith.constant 0 : index
    %0 = vector.load %arg1[%c0, %c0_0] : memref<8x784xbf16, #tpu.memory_space<vmem>>, vector<8x784xbf16>
    %c0_1 = arith.constant 0 : index
    %c0_2 = arith.constant 0 : index
    %1 = vector.load %arg2[%c0_1, %c0_2] : memref<784x256xbf16, #tpu.memory_space<vmem>>, vector<784x256xbf16>
    %cst = arith.constant dense<0.000000e+00> : vector<8x256xf32>
    %2 = tpu.matmul %0, %1, %cst {dimension_numbers = #tpu.dot_dimension_numbers<[1], [0], [0], [1], [0, 0, 1, 1], [], []>} : vector<8x784xbf16>, vector<784x256xbf16>, vector<8x256xf32> -> vector<8x256xf32>
    %c0_3 = arith.constant 0 : index
    %c0_4 = arith.constant 0 : index
    %3 = vector.load %arg3[%c0_3, %c0_4] : memref<1x256xf32, #tpu.memory_space<vmem>>, vector<1x256xf32>
    %4 = vector.broadcast %3 : vector<1x256xf32> to vector<8x256xf32>
    %5 = arith.addf %2, %4 : vector<8x256xf32>
    %cst_5 = arith.constant 0.000000e+00 : f32
    %6 = vector.broadcast %cst_5 : f32 to vector<8x256xf32>
    %7 = arith.maximumf %5, %6 : vector<8x256xf32>
    %8 = arith.truncf %7 : vector<8x256xf32> to vector<8x256xbf16>
    %c0_6 = arith.constant 0 : index
    %c0_7 = arith.constant 0 : index
    %9 = vector.load %arg4[%c0_6, %c0_7] : memref<256x256xbf16, #tpu.memory_space<vmem>>, vector<256x256xbf16>
    %cst_8 = arith.constant dense<0.000000e+00> : vector<8x256xf32>
    %10 = tpu.matmul %8, %9, %cst_8 {dimension_numbers = #tpu.dot_dimension_numbers<[1], [0], [0], [1], [0, 0, 1, 1], [], []>} : vector<8x256xbf16>, vector<256x256xbf16>, vector<8x256xf32> -> vector<8x256xf32>
    %c0_9 = arith.constant 0 : index
    %c0_10 = arith.constant 0 : index
    %11 = vector.load %arg5[%c0_9, %c0_10] : memref<1x256xf32, #tpu.memory_space<vmem>>, vector<1x256xf32>
    %12 = vector.broadcast %11 : vector<1x256xf32> to vector<8x256xf32>
    %13 = arith.addf %10, %12 : vector<8x256xf32>
    %cst_11 = arith.constant 0.000000e+00 : f32
    %14 = vector.broadcast %cst_11 : f32 to vector<8x256xf32>
    %15 = arith.maximumf %13, %14 : vector<8x256xf32>
    %16 = arith.truncf %15 : vector<8x256xf32> to vector<8x256xbf16>
    %c0_12 = arith.constant 0 : index
    %c0_13 = arith.constant 0 : index
    %17 = vector.load %arg6[%c0_12, %c0_13] : memref<256x128xbf16, #tpu.memory_space<vmem>>, vector<256x128xbf16>
    %cst_14 = arith.constant dense<0.000000e+00> : vector<8x128xf32>
    %18 = tpu.matmul %16, %17, %cst_14 {dimension_numbers = #tpu.dot_dimension_numbers<[1], [0], [0], [1], [0, 0, 1, 1], [], []>} : vector<8x256xbf16>, vector<256x128xbf16>, vector<8x128xf32> -> vector<8x128xf32>
    %c0_15 = arith.constant 0 : index
    %c0_16 = arith.constant 0 : index
    %19 = vector.load %arg7[%c0_15, %c0_16] : memref<1x128xf32, #tpu.memory_space<vmem>>, vector<1x128xf32>
    %20 = vector.broadcast %19 : vector<1x128xf32> to vector<8x128xf32>
    %21 = arith.addf %18, %20 : vector<8x128xf32>
    %c0_17 = arith.constant 0 : index
    %c0_18 = arith.constant 0 : index
    %22 = vector.load %arg8[%c0_17, %c0_18] : memref<8x128xf32, #tpu.memory_space<vmem>>, vector<8x128xf32>
    tpu.vector_store %arg8[%c0_17, %c0_18], %21 {strides = array<i32>} : memref<8x128xf32, #tpu.memory_space<vmem>>, vector<8x128xf32>,
    return
  }
  func.func @transform_0(%arg0: i32) -> (i32, i32) {
    %c0_i32 = arith.constant 0 : i32
    %c0_i32_0 = arith.constant 0 : i32
    return %arg0, %c0_i32 : i32, i32
  }
  func.func @transform_1(%arg0: i32) -> (i32, i32) {
    %c0_i32 = arith.constant 0 : i32
    %c0_i32_0 = arith.constant 0 : i32
    %c0_i32_1 = arith.constant 0 : i32
    return %c0_i32, %c0_i32_0 : i32, i32
  }
  func.func @transform_2(%arg0: i32) -> (i32, i32) {
    %c0_i32 = arith.constant 0 : i32
    %c0_i32_0 = arith.constant 0 : i32
    %c0_i32_1 = arith.constant 0 : i32
    return %c0_i32, %c0_i32_0 : i32, i32
  }
  func.func @transform_3(%arg0: i32) -> (i32, i32) {
    %c0_i32 = arith.constant 0 : i32
    %c0_i32_0 = arith.constant 0 : i32
    %c0_i32_1 = arith.constant 0 : i32
    return %c0_i32, %c0_i32_0 : i32, i32
  }
  func.func @transform_4(%arg0: i32) -> (i32, i32) {
    %c0_i32 = arith.constant 0 : i32
    %c0_i32_0 = arith.constant 0 : i32
    %c0_i32_1 = arith.constant 0 : i32
    return %c0_i32, %c0_i32_0 : i32, i32
  }
  func.func @transform_5(%arg0: i32) -> (i32, i32) {
    %c0_i32 = arith.constant 0 : i32
    %c0_i32_0 = arith.constant 0 : i32
    %c0_i32_1 = arith.constant 0 : i32
    return %c0_i32, %c0_i32_0 : i32, i32
  }
  func.func @transform_6(%arg0: i32) -> (i32, i32) {
    %c0_i32 = arith.constant 0 : i32
    %c0_i32_0 = arith.constant 0 : i32
    %c0_i32_1 = arith.constant 0 : i32
    return %c0_i32, %c0_i32_0 : i32, i32
  }
  func.func @transform_7(%arg0: i32) -> (i32, i32) {
    %c0_i32 = arith.constant 0 : i32
    %c0_i32_0 = arith.constant 0 : i32
    return %arg0, %c0_i32 : i32, i32
  }
}

</mosaic_0001>

<bundles_post_ra>
// kernel: classifier_e_forward.1
= control target key start
LH: loop header
LB: loop body
LE: loop exit
PB: predicated region body
PF: predicated region fallthrough
CT: control target
= control target key end

     0   :  { %vm655_vm0 = vcmask 130048   ;;  %s2161_s1 = inlined_call_operand.vmem [shape: bf16[784,256], index: 1, kind: input, shape index: {}]   ;;  %s2162_s0 = inlined_call_operand.vmem [shape: bf16[8,784], index: 0, kind: input, shape index: {}]   ;;  %s2163_s3 = inlined_call_operand.vmem [shape: bf16[256,256], index: 3, kind: input, shape index: {}]   ;;  %s2164_s5 = inlined_call_operand.vmem [shape: bf16[256,128], index: 5, kind: input, shape index: {}]   ;;  %s2165_s2 = inlined_call_operand.vmem [shape: f32[1,256], index: 2, kind: input, shape index: {}]   ;;  %s2166_s4 = inlined_call_operand.vmem [shape: f32[1,256], index: 4, kind: input, shape index: {}]   ;;  %s2167_s6 = inlined_call_operand.vmem [shape: f32[1,128], index: 6, kind: input, shape index: {}]   ;;  %s2168_s7 = inlined_call_operand.vmem [shape: f32[8,128], index: 7, kind: output, shape index: {}]  }
   0x1   :  { %v1434_v0 = vld [vmem:[%s2161_s1 + $0x74] ss:$8 sps:$4 sm:$0xff]   ;;  %v1436_v1 = vld [vmem:[%s2161_s1 + $0x70] ss:$8 sps:$4 sm:$0xff]   ;;  %v1440_v4 = vld [vmem:[%s2161_s1 + $0x64] ss:$8 sps:$4 sm:$0xff]  }
   0x2   :  { %659 = vmatprep.subr.bf16.mxu0 %v1434_v0  ;;  %v1437_v2 = vld [vmem:[%s2161_s1 + $0x174] ss:$8 sps:$4 sm:$0xff]   ;;  %v1439_v3 = vld [vmem:[%s2161_s1 + $0x170] ss:$8 sps:$4 sm:$0xff]   ;;  %v1442_v5 = vld [vmem:[%s2161_s1 + $0x60] ss:$8 sps:$4 sm:$0xff]  }
   0x3   :  { %660 = vmatpush1.bf16.msra.mxu0 %v1436_v1  ;;  %700 = vmatprep.subr.bf16.mxu1 %v1437_v2  ;;  %v1443_v6 = vld [vmem:[%s2161_s1 + $0x164] ss:$8 sps:$4 sm:$0xff]   ;;  %v1445_v7 = vld [vmem:[%s2161_s1 + $0x160] ss:$8 sps:$4 sm:$0xff]   ;;  %v1446_v8 = vld [vmem:[%s2161_s1 + $0x54] ss:$8 sps:$4 sm:$0xff]  }
   0x4   :  { %701 = vmatpush1.bf16.msra.mxu1 %v1439_v3  ;;  %661 = vmatprep.subr.bf16.mxu0 %v1440_v4  ;;  %v1448_v9 = vld [vmem:[%s2161_s1 + $0x50] ss:$8 sps:$4 sm:$0xff]   ;;  %v1449_v10 = vld [vmem:[%s2161_s1 + $0x154] ss:$8 sps:$4 sm:$0xff]   ;;  %v1452_v11 = vld [vmem:[%s2161_s1 + $0x44] ss:$8 sps:$4 sm:$0xff]  }
   0x5   :  { %702 = vmatprep.subr.bf16.mxu1 %v1443_v6  ;;  %v1451_v12 = vld [vmem:[%s2161_s1 + $0x150] ss:$8 sps:$4 sm:$0xff]   ;;  %v1455_v13 = vld [vmem:[%s2161_s1 + $0x144] ss:$8 sps:$4 sm:$0xff]   ;;  %v1454_v14 = vld [vmem:[%s2161_s1 + $0x40] ss:$8 sps:$4 sm:$0xff]  }
   0x6   :  { %v1458_v15 = vld [vmem:[%s2161_s1 + $0x34] ss:$8 sps:$4 sm:$0xff]   ;;  %v1457_v16 = vld [vmem:[%s2161_s1 + $0x140] ss:$8 sps:$4 sm:$0xff]   ;;  %v1460_v18 = vld [vmem:[%s2161_s1 + $0x30] ss:$8 sps:$4 sm:$0xff]  }
   0x7   :  { %662 = vmatpush1.bf16.msra.mxu0 %v1442_v5  ;;  %v1461_v17 = vld [vmem:[%s2161_s1 + $0x134] ss:$8 sps:$4 sm:$0xff]   ;;  %v1464_v19 = vld [vmem:[%s2161_s1 + $0x24] ss:$8 sps:$4 sm:$0xff]   ;;  %v1463_v20 = vld [vmem:[%s2161_s1 + $0x130] ss:$8 sps:$4 sm:$0xff]  }
   0x8   :  { %663 = vmatprep.subr.bf16.mxu0 %v1446_v8  ;;  %703 = vmatpush1.bf16.msra.mxu1 %v1445_v7  ;;  %v1467_v21 = vld [vmem:[%s2161_s1 + $0x124] ss:$8 sps:$4 sm:$0xff]   ;;  %v1466_v22 = vld [vmem:[%s2161_s1 + $0x20] ss:$8 sps:$4 sm:$0xff]   ;;  %v1470_v23 = vld [vmem:[%s2161_s1 + $0x14] ss:$8 sps:$4 sm:$0xff]  }
   0x9   :  { %704 = vmatprep.subr.bf16.mxu1 %v1449_v10  ;;  %v1469_v24 = vld [vmem:[%s2161_s1 + $0x120] ss:$8 sps:$4 sm:$0xff]   ;;  %v1473_v25 = vld [vmem:[%s2161_s1 + $0x114] ss:$8 sps:$4 sm:$0xff]   ;;  %v1472_v26 = vld [vmem:[%s2161_s1 + $0x10] ss:$8 sps:$4 sm:$0xff]  }
   0xa   :  { %v1476_v27 = vld [vmem:[%s2161_s1 + $0x4] ss:$8 sps:$4 sm:$0xff]   ;;  %v1475_v28 = vld [vmem:[%s2161_s1 + $0x110] ss:$8 sps:$4 sm:$0xff]   ;;  %v1478_v30 = vld [vmem:[%s2161_s1] ss:$8 sps:$4 sm:$0xff]  }
   0xb   :  { %664 = vmatpush1.bf16.msra.mxu0 %v1448_v9  ;;  %v1479_v29 = vld [vmem:[%s2161_s1 + $0x104] ss:$8 sps:$4 sm:$0xff]   ;;  %v1482_v31 = vld [vmem:[%s2161_s1 + $0xf4] ss:$8 sps:$4 sm:$0xff]   ;;  %v1481_v32 = vld [vmem:[%s2161_s1 + $0x100] ss:$8 sps:$4 sm:$0xff]  }
   0xc   :  { %665 = vmatprep.subr.bf16.mxu0 %v1452_v11  ;;  %705 = vmatpush1.bf16.msra.mxu1 %v1451_v12  ;;  %v1485_v33 = vld [vmem:[%s2161_s1 + $0x1f4] ss:$8 sps:$4 sm:$0xff]   ;;  %v1484_v34 = vld [vmem:[%s2161_s1 + $0xf0] ss:$8 sps:$4 sm:$0xff]   ;;  %v1488_v35 = vld [vmem:[%s2161_s1 + $0xe4] ss:$8 sps:$4 sm:$0xff]  }
   0xd   :  { %706 = vmatprep.subr.bf16.mxu1 %v1455_v13  ;;  %v1487_v36 = vld [vmem:[%s2161_s1 + $0x1f0] ss:$8 sps:$4 sm:$0xff]   ;;  %v1491_v37 = vld [vmem:[%s2161_s1 + $0x1e4] ss:$8 sps:$4 sm:$0xff]   ;;  %v1490_v38 = vld [vmem:[%s2161_s1 + $0xe0] ss:$8 sps:$4 sm:$0xff]  }
   0xe   :  { %v1494_v39 = vld [vmem:[%s2161_s1 + $0xd4] ss:$8 sps:$4 sm:$0xff]   ;;  %v1493_v40 = vld [vmem:[%s2161_s1 + $0x1e0] ss:$8 sps:$4 sm:$0xff]   ;;  %v1496_v42 = vld [vmem:[%s2161_s1 + $0xd0] ss:$8 sps:$4 sm:$0xff]  }
   0xf   :  { %666 = vmatpush1.bf16.msra.mxu0 %v1454_v14  ;;  %v1497_v41 = vld [vmem:[%s2161_s1 + $0x1d4] ss:$8 sps:$4 sm:$0xff]   ;;  %v1500_v43 = vld [vmem:[%s2161_s1 + $0xc4] ss:$8 sps:$4 sm:$0xff]   ;;  %v1499_v44 = vld [vmem:[%s2161_s1 + $0x1d0] ss:$8 sps:$4 sm:$0xff]  }
  0x10   :  { %667 = vmatprep.subr.bf16.mxu0 %v1458_v15  ;;  %707 = vmatpush1.bf16.msra.mxu1 %v1457_v16  ;;  %v1503_v45 = vld [vmem:[%s2161_s1 + $0x1c4] ss:$8 sps:$4 sm:$0xff]   ;;  %v1502_v47 = vld [vmem:[%s2161_s1 + $0xc0] ss:$8 sps:$4 sm:$0xff]   ;;  %v1506_v50 = vld [vmem:[%s2161_s1 + $0xb4] ss:$8 sps:$4 sm:$0xff]  }
  0x11   :  { %708 = vmatprep.subr.bf16.mxu1 %v1461_v17  ;;  %v27_v46 = vld [vmem:[%s2162_s0] sm:$0xff]  ;;  %v28_v51 = vld [vmem:[%s2162_s0 + $0x8] sm:$0xff]  ;;  %v1509_v52 = vld [vmem:[%s2161_s1 + $0x1b4] ss:$8 sps:$4 sm:$0xff]   ;;  %v1652_v15 = vmov 0  }
  0x12   :  { %v1257_v48 = vcombine.high %v27_v46, %v27_v46  ;;  %v1505_v49 = vld [vmem:[%s2161_s1 + $0x1c0] ss:$8 sps:$4 sm:$0xff]   ;;  %v1259_v53 = vcombine.high %v28_v51, %v28_v51  ;;  %v1508_v54 = vld [vmem:[%s2161_s1 + $0xb0] ss:$8 sps:$4 sm:$0xff]   ;;  %v1512_v55 = vld [vmem:[%s2161_s1 + $0xa4] ss:$8 sps:$4 sm:$0xff]   ;;  %v1256_v5 = vcombine.low %v27_v46, %v27_v46  ;;  %v1258_v8 = vcombine.low %v28_v51, %v28_v51 }
  0x13   :  { %668 = vmatpush1.bf16.msra.mxu0 %v1460_v18  ;;  %v1511_v56 = vld [vmem:[%s2161_s1 + $0x1b0] ss:$8 sps:$4 sm:$0xff]   ;;  %v1515_v57 = vld [vmem:[%s2161_s1 + $0x1a4] ss:$8 sps:$4 sm:$0xff]   ;;  %v1514_v58 = vld [vmem:[%s2161_s1 + $0xa0] ss:$8 sps:$4 sm:$0xff]  }
  0x14   :  { %669 = vmatprep.subr.bf16.mxu0 %v1464_v19  ;;  %709 = vmatpush1.bf16.msra.mxu1 %v1463_v20  ;;  %v1518_v59 = vld [vmem:[%s2161_s1 + $0x94] ss:$8 sps:$4 sm:$0xff]   ;;  %v1517_v60 = vld [vmem:[%s2161_s1 + $0x1a0] ss:$8 sps:$4 sm:$0xff]   ;;  %v1520_v62 = vld [vmem:[%s2161_s1 + $0x90] ss:$8 sps:$4 sm:$0xff]  }
  0x15   :  { %710 = vmatprep.subr.bf16.mxu1 %v1467_v21  ;;  %691 = vmatprep.mubr.bf16.mxu0 %v1257_v48  ;;  %v1521_v61 = vld [vmem:[%s2161_s1 + $0x194] ss:$8 sps:$4 sm:$0xff]   ;;  %v1524_v63 = vld [vmem:[%s2161_s1 + $0x84] ss:$8 sps:$4 sm:$0xff]   ;;  %v1523_v0 = vld [vmem:[%s2161_s1 + $0x190] ss:$8 sps:$4 sm:$0xff]  }
  0x16   :  { %732 = vmatprep.mubr.bf16.mxu1 %v1259_v53  ;;  %v1527_v1 = vld [vmem:[%s2161_s1 + $0x184] ss:$8 sps:$4 sm:$0xff]   ;;  %v1526_v2 = vld [vmem:[%s2161_s1 + $0x80] ss:$8 sps:$4 sm:$0xff]   ;;  %v1535_v3 = vld [vmem:[%s2161_s1 + $0x274] ss:$8 sps:$4 sm:$0xff]  }
  0x17   :  { %670 = vmatpush1.bf16.msra.mxu0 %v1466_v22  ;;  %v1532_v4 = vld [vmem:[%s2161_s1 + $0x180] ss:$8 sps:$4 sm:$0xff]   ;;  %v1533_v6 = vld [vmem:[%s2161_s1 + $0x270] ss:$8 sps:$4 sm:$0xff]   ;;  %v1540_v7 = vld [vmem:[%s2161_s1 + $0x264] ss:$8 sps:$4 sm:$0xff]  }
  0x18   :  { %671 = vmatprep.subr.bf16.mxu0 %v1470_v23  ;;  %711 = vmatpush1.bf16.msra.mxu1 %v1469_v24  ;;  %v1580_v9 = vld [vmem:[%s2161_s1 + $0x300] ss:$8 sps:$4 sm:$0xff]   ;;  %v1582_v10 = vld [vmem:[%s2161_s1 + $0x304] ss:$8 sps:$4 sm:$0xff]   ;;  %v1909_v11 = vld [vmem:[%s2162_s0 + $0x10] sm:$0xff] }
  0x19   :  { %712 = vmatprep.subr.bf16.mxu1 %v1473_v25  ;;  %v1538_v12 = vld [vmem:[%s2161_s1 + $0x260] ss:$8 sps:$4 sm:$0xff]   ;;  %v1261_v13 = vcombine.high %v1909_v11, %v1909_v11  ;;  %v1543_v14 = vld [vmem:[%s2161_s1 + $0x254] ss:$8 sps:$4 sm:$0xff]   ;;  %v1541_v16 = vld [vmem:[%s2161_s1 + $0x250] ss:$8 sps:$4 sm:$0xff]  }
  0x1a   :  { %v1531_v17 = vld [vmem:[%s2162_s0 + $0x18] ss:$0 sps:$4 sm:$0xff]   ;;  %v1546_v18 = vld [vmem:[%s2161_s1 + $0x244] ss:$8 sps:$4 sm:$0xff]   ;;  %v1544_v19 = vld [vmem:[%s2161_s1 + $0x240] ss:$8 sps:$4 sm:$0xff]  }
  0x1b   :  { %672 = vmatpush1.bf16.msra.mxu0 %v1472_v26  ;;  %v1549_v20 = vld [vmem:[%s2161_s1 + $0x234] ss:$8 sps:$4 sm:$0xff]   ;;  %v1547_v21 = vld [vmem:[%s2161_s1 + $0x230] ss:$8 sps:$4 sm:$0xff]   ;;  %v1552_v22 = vld [vmem:[%s2161_s1 + $0x224] ss:$8 sps:$4 sm:$0xff]  }
  0x1c   :  { %673 = vmatprep.subr.bf16.mxu0 %v1476_v27  ;;  %713 = vmatpush1.bf16.msra.mxu1 %v1475_v28  ;;  %v1550_v23 = vld [vmem:[%s2161_s1 + $0x220] ss:$8 sps:$4 sm:$0xff]   ;;  %v1555_v24 = vld [vmem:[%s2161_s1 + $0x214] ss:$8 sps:$4 sm:$0xff]   ;;  %v1553_v25 = vld [vmem:[%s2161_s1 + $0x210] ss:$8 sps:$4 sm:$0xff]  }
  0x1d   :  { %714 = vmatprep.subr.bf16.mxu1 %v1479_v29  ;;  %v1558_v26 = vld [vmem:[%s2161_s1 + $0x204] ss:$8 sps:$4 sm:$0xff]   ;;  %v1556_v27 = vld [vmem:[%s2161_s1 + $0x200] ss:$8 sps:$4 sm:$0xff]   ;;  %v1561_v28 = vld [vmem:[%s2161_s1 + $0x2f4] ss:$8 sps:$4 sm:$0xff]  }
  0x1e   :  { %v1559_v29 = vld [vmem:[%s2161_s1 + $0x2f0] ss:$8 sps:$4 sm:$0xff]   ;;  %v1590_v46 = vld [vmem:[%s2163_s3 + $0x74] ss:$8 sps:$4 sm:$0xff]   ;;  %v1591_v48 = vld [vmem:[%s2163_s3 + $0x60] ss:$8 sps:$4 sm:$0xff]  }
  0x1f   :  { %674 = vmatpush1.bf16.msra.mxu0 %v1478_v30  ;;  %v1564_v30 = vld [vmem:[%s2161_s1 + $0x2e4] ss:$8 sps:$4 sm:$0xff]   ;;  %v1602_v53 = vld [vmem:[%s2163_s3 + $0x34] ss:$8 sps:$4 sm:$0xff]  }
  0x20   :  { %675 = vmatprep.subr.bf16.mxu0 %v1482_v31  ;;  %715 = vmatpush1.bf16.msra.mxu1 %v1481_v32  ;;  %v1562_v31 = vld [vmem:[%s2161_s1 + $0x2e0] ss:$8 sps:$4 sm:$0xff]   ;;  %v1567_v32 = vld [vmem:[%s2161_s1 + $0x2d4] ss:$8 sps:$4 sm:$0xff]   ;;  %v1599_v51 = vld [vmem:[%s2163_s3 + $0x44] ss:$8 sps:$4 sm:$0xff]  }
  0x21   :  { %716 = vmatprep.subr.bf16.mxu1 %v1485_v33  ;;  %v1565_v33 = vld [vmem:[%s2161_s1 + $0x2d0] ss:$8 sps:$4 sm:$0xff]  }
  0x23   :  { %676 = vmatpush2.bf16.msra.mxu0 %v1484_v34  ;;  %v1570_v34 = vld [vmem:[%s2161_s1 + $0x2c4] ss:$8 sps:$4 sm:$0xff]  }
  0x24   :  { %677 = vmatprep.subr.bf16.mxu0 %v1488_v35  ;;  %717 = vmatpush2.bf16.msra.mxu1 %v1487_v36  ;;  %v1568_v35 = vld [vmem:[%s2161_s1 + $0x2c0] ss:$8 sps:$4 sm:$0xff]   ;;  %v1573_v36 = vld [vmem:[%s2161_s1 + $0x2b4] ss:$8 sps:$4 sm:$0xff]  }
  0x25   :  { %718 = vmatprep.subr.bf16.mxu1 %v1491_v37  ;;  %v1571_v37 = vld [vmem:[%s2161_s1 + $0x2b0] ss:$8 sps:$4 sm:$0xff]  }
  0x27   :  { %678 = vmatpush2.bf16.msra.mxu0 %v1490_v38  ;;  %v1576_v38 = vld [vmem:[%s2161_s1 + $0x2a4] ss:$8 sps:$4 sm:$0xff]  }
  0x28   :  { %679 = vmatprep.subr.bf16.mxu0 %v1494_v39  ;;  %719 = vmatpush2.bf16.msra.mxu1 %v1493_v40  ;;  %v1574_v39 = vld [vmem:[%s2161_s1 + $0x2a0] ss:$8 sps:$4 sm:$0xff]   ;;  %v1579_v40 = vld [vmem:[%s2161_s1 + $0x294] ss:$8 sps:$4 sm:$0xff]  }
  0x29   :  { %720 = vmatprep.subr.bf16.mxu1 %v1497_v41  ;;  %v1577_v41 = vld [vmem:[%s2161_s1 + $0x290] ss:$8 sps:$4 sm:$0xff]  }
  0x2b   :  { %680 = vmatpush2.bf16.msra.mxu0 %v1496_v42  ;;  %v1585_v42 = vld [vmem:[%s2161_s1 + $0x284] ss:$8 sps:$4 sm:$0xff]  }
  0x2c   :  { %681 = vmatprep.subr.bf16.mxu0 %v1500_v43  ;;  %721 = vmatpush2.bf16.msra.mxu1 %v1499_v44  ;;  %v1583_v43 = vld [vmem:[%s2161_s1 + $0x280] ss:$8 sps:$4 sm:$0xff]   ;;  %v1260_v44 = vcombine.low %v1909_v11, %v1909_v11  ;;  %v1635_v11 = vld [vmem:[%s2163_s3 + $0x84] ss:$8 sps:$4 sm:$0xff]  }
  0x2d   :  { %722 = vmatprep.subr.bf16.mxu1 %v1503_v45  ;;  %v1588_v45 = vld [vmem:[%s2163_s3 + $0x70] ss:$8 sps:$4 sm:$0xff]  }
  0x2f   :  { %682 = vmatpush2.bf16.msra.mxu0 %v1502_v47  ;;  %v1593_v47 = vld [vmem:[%s2163_s3 + $0x64] ss:$8 sps:$4 sm:$0xff]  }
  0x30   :  { %683 = vmatprep.subr.bf16.mxu0 %v1506_v50  ;;  %723 = vmatpush2.bf16.msra.mxu1 %v1505_v49  ;;  %v1596_v49 = vld [vmem:[%s2163_s3 + $0x54] ss:$8 sps:$4 sm:$0xff]   ;;  %v1594_v50 = vld [vmem:[%s2163_s3 + $0x50] ss:$8 sps:$4 sm:$0xff]  }
  0x31   :  { %724 = vmatprep.subr.bf16.mxu1 %v1509_v52  ;;  %v1597_v52 = vld [vmem:[%s2163_s3 + $0x40] ss:$8 sps:$4 sm:$0xff]  }
  0x33   :  { %684 = vmatpush2.bf16.msra.mxu0 %v1508_v54  ;;  %v1600_v54 = vld [vmem:[%s2163_s3 + $0x30] ss:$8 sps:$4 sm:$0xff]  }
  0x34   :  { %685 = vmatprep.subr.bf16.mxu0 %v1512_v55  ;;  %725 = vmatpush2.bf16.msra.mxu1 %v1511_v56  ;;  %v1605_v55 = vld [vmem:[%s2163_s3 + $0x24] ss:$8 sps:$4 sm:$0xff]   ;;  %v1603_v56 = vld [vmem:[%s2163_s3 + $0x20] ss:$8 sps:$4 sm:$0xff]  }
  0x35   :  { %726 = vmatprep.subr.bf16.mxu1 %v1515_v57  ;;  %v1608_v57 = vld [vmem:[%s2163_s3 + $0x14] ss:$8 sps:$4 sm:$0xff]  }
  0x37   :  { %686 = vmatpush2.bf16.msra.mxu0 %v1514_v58  ;;  %v1606_v58 = vld [vmem:[%s2163_s3 + $0x10] ss:$8 sps:$4 sm:$0xff]  }
  0x38   :  { %687 = vmatprep.subr.bf16.mxu0 %v1518_v59  ;;  %727 = vmatpush2.bf16.msra.mxu1 %v1517_v60  ;;  %v1611_v59 = vld [vmem:[%s2163_s3 + $0x4] ss:$8 sps:$4 sm:$0xff]   ;;  %v1609_v60 = vld [vmem:[%s2163_s3] ss:$8 sps:$4 sm:$0xff]  }
  0x39   :  { %728 = vmatprep.subr.bf16.mxu1 %v1521_v61  ;;  %v1614_v61 = vld [vmem:[%s2163_s3 + $0xf4] ss:$8 sps:$4 sm:$0xff]  }
  0x3b   :  { %688 = vmatpush2.bf16.msra.mxu0 %v1520_v62  ;;  %v1612_v62 = vld [vmem:[%s2163_s3 + $0xf0] ss:$8 sps:$4 sm:$0xff]  }
  0x3c   :  { %689 = vmatprep.subr.bf16.mxu0 %v1524_v63  ;;  %729 = vmatpush2.bf16.msra.mxu1 %v1523_v0  ;;  %v1617_v63 = vld [vmem:[%s2163_s3 + $0xe4] ss:$8 sps:$4 sm:$0xff]   ;;  %v1615_v0 = vld [vmem:[%s2163_s3 + $0xe0] ss:$8 sps:$4 sm:$0xff]  }
  0x3d   :  { %730 = vmatprep.subr.bf16.mxu1 %v1527_v1  ;;  %v1620_v1 = vld [vmem:[%s2163_s3 + $0xd4] ss:$8 sps:$4 sm:$0xff]  }
  0x3f   :  { %690 = vmatpush2.bf16.msra.mxu0 %v1526_v2  ;;  %v1618_v2 = vld [vmem:[%s2163_s3 + $0xd0] ss:$8 sps:$4 sm:$0xff]  }
  0x40   :  { %741 = vmatprep.subr.bf16.mxu0 %v1535_v3  ;;  %731 = vmatpush2.bf16.msra.mxu1 %v1532_v4  ;;  %v1623_v3 = vld [vmem:[%s2163_s3 + $0xc4] ss:$8 sps:$4 sm:$0xff]   ;;  %v1621_v4 = vld [vmem:[%s2163_s3 + $0xc0] ss:$8 sps:$4 sm:$0xff]  }
  0x41   :  { %796 = vmatprep.subr.bf16.mxu1 %v1582_v10  ;;  %v1630_v10 = vld [vmem:[%s2163_s3 + $0x90] ss:$8 sps:$4 sm:$0xff]  }
  0x42   :  { %692 = vmatmul.mubr.bf16.vlgmr.msra.gmra.mxu0 %v1256_v5  ;;  %v1626_v5 = vld [vmem:[%s2163_s3 + $0xb4] ss:$8 sps:$4 sm:$0xff]  }
  0x43   :  { %742 = vmatpush1.bf16.msra.mxu0 %v1533_v6  ;;  %733 = vmatmul.mubr.bf16.vlgmr.msra.gmra.mxu1 %v1258_v8  ;;  %v1624_v6 = vld [vmem:[%s2163_s3 + $0xb0] ss:$8 sps:$4 sm:$0xff]   ;;  %v1627_v8 = vld [vmem:[%s2163_s3 + $0xa0] ss:$8 sps:$4 sm:$0xff]  }
  0x44   :  { %743 = vmatprep.subr.bf16.mxu0 %v1540_v7  ;;  %797 = vmatpush1.bf16.msra.mxu1 %v1580_v9  ;;  %v1629_v7 = vld [vmem:[%s2163_s3 + $0xa4] ss:$8 sps:$4 sm:$0xff]   ;;  %v1632_v9 = vld [vmem:[%s2163_s3 + $0x94] ss:$8 sps:$4 sm:$0xff]  }
  0x45   :  { %814 = vmatprep.mubr.bf16.mxu1 %v1652_v15  ;;  %773 = vmatprep.mubr.bf16.mxu0 %v1261_v13  ;;  %v1636_v13 = vld [vmem:[%s2164_s5 + $0x78] sm:$0xff]   ;;  %v1638_v15 = vld [vmem:[%s2164_s5 + $0x70] sm:$0xff]  }
  0x46   :  { %1031 = vmatprep.subr.bf16.mxu1 %v1590_v46 }
  0x47   :  { %744 = vmatpush1.bf16.msra.mxu0 %v1538_v12  ;;  %v1633_v12 = vld [vmem:[%s2163_s3 + $0x80] ss:$8 sps:$4 sm:$0xff]  }
  0x48   :  { %745 = vmatprep.subr.bf16.mxu0 %v1543_v14  ;;  %v1637_v14 = vld [vmem:[%s2164_s5 + $0x38] sm:$0xff]  }
  0x4b   :  { %746 = vmatpush1.bf16.msra.mxu0 %v1541_v16  ;;  %1361 = vmatmul.mubr.msk.bf16.vlgmr.msra.gmra.mxu1 %vm655_vm0, %v1531_v17  ;;  %v1639_v16 = vld [vmem:[%s2164_s5 + $0x30] sm:$0xff]   ;;  %v1640_v17 = vld [vmem:[%s2164_s5 + $0x68] sm:$0xff]  }
  0x4c   :  { %747 = vmatprep.subr.bf16.mxu0 %v1546_v18  ;;  %1032 = vmatpush1.bf16.msra.mxu1 %v1588_v45  ;;  %v1641_v18 = vld [vmem:[%s2164_s5 + $0x28] sm:$0xff]  }
  0x4d   :  { %1033 = vmatprep.subr.bf16.mxu1 %v1593_v47 }
  0x4f   :  { %748 = vmatpush1.bf16.msra.mxu0 %v1544_v19  ;;  %v1642_v19 = vld [vmem:[%s2164_s5 + $0x60] sm:$0xff]  }
  0x50   :  { %749 = vmatprep.subr.bf16.mxu0 %v1549_v20  ;;  %1034 = vmatpush1.bf16.msra.mxu1 %v1591_v48  ;;  %v1643_v20 = vld [vmem:[%s2164_s5 + $0x20] sm:$0xff]  }
  0x51   :  { %1035 = vmatprep.subr.bf16.mxu1 %v1596_v49 }
  0x53   :  { %750 = vmatpush1.bf16.msra.mxu0 %v1547_v21  ;;  %v1644_v21 = vld [vmem:[%s2164_s5 + $0x58] sm:$0xff]  }
  0x54   :  { %751 = vmatprep.subr.bf16.mxu0 %v1552_v22  ;;  %1036 = vmatpush1.bf16.msra.mxu1 %v1594_v50  ;;  %v1645_v22 = vld [vmem:[%s2164_s5 + $0x18] sm:$0xff]  }
  0x55   :  { %1037 = vmatprep.subr.bf16.mxu1 %v1599_v51 }
  0x57   :  { %752 = vmatpush1.bf16.msra.mxu0 %v1550_v23  ;;  %v1646_v23 = vld [vmem:[%s2164_s5 + $0x50] sm:$0xff]  }
  0x58   :  { %753 = vmatprep.subr.bf16.mxu0 %v1555_v24  ;;  %1038 = vmatpush1.bf16.msra.mxu1 %v1597_v52  ;;  %v1647_v24 = vld [vmem:[%s2164_s5 + $0x10] sm:$0xff]  }
  0x59   :  { %1039 = vmatprep.subr.bf16.mxu1 %v1602_v53 }
  0x5b   :  { %754 = vmatpush1.bf16.msra.mxu0 %v1553_v25 }
  0x5c   :  { %755 = vmatprep.subr.bf16.mxu0 %v1558_v26  ;;  %1040 = vmatpush1.bf16.msra.mxu1 %v1600_v54 }
  0x5d   :  { %1041 = vmatprep.subr.bf16.mxu1 %v1605_v55 }
  0x5f   :  { %756 = vmatpush1.bf16.msra.mxu0 %v1556_v27 }
  0x60   :  { %757 = vmatprep.subr.bf16.mxu0 %v1561_v28  ;;  %1042 = vmatpush1.bf16.msra.mxu1 %v1603_v56 }
  0x61   :  { %1043 = vmatprep.subr.bf16.mxu1 %v1608_v57 }
  0x63   :  { %758 = vmatpush2.bf16.msra.mxu0 %v1559_v29 }
  0x64   :  { %759 = vmatprep.subr.bf16.mxu0 %v1564_v30  ;;  %1044 = vmatpush1.bf16.msra.mxu1 %v1606_v58 }
  0x65   :  { %1045 = vmatprep.subr.bf16.mxu1 %v1611_v59 }
  0x67   :  { %760 = vmatpush2.bf16.msra.mxu0 %v1562_v31 }
  0x68   :  { %761 = vmatprep.subr.bf16.mxu0 %v1567_v32  ;;  %1046 = vmatpush1.bf16.msra.mxu1 %v1609_v60  ;;  %v1648_v60 = vld [vmem:[%s2164_s5 + $0x48] sm:$0xff]  }
  0x69   :  { %1047 = vmatprep.subr.bf16.mxu1 %v1614_v61  ;;  %v1649_v61 = vld [vmem:[%s2164_s5 + $0x8] sm:$0xff]  }
  0x6b   :  { %762 = vmatpush2.bf16.msra.mxu0 %v1565_v33 }
  0x6c   :  { %763 = vmatprep.subr.bf16.mxu0 %v1570_v34  ;;  %1048 = vmatpush2.bf16.msra.mxu1 %v1612_v62  ;;  %v1650_v62 = vld [vmem:[%s2164_s5 + $0x40] sm:$0xff]  }
  0x6d   :  { %1049 = vmatprep.subr.bf16.mxu1 %v1617_v63  ;;  %v1651_v63 = vld [vmem:[%s2164_s5] sm:$0xff]  }
  0x6f   :  { %764 = vmatpush2.bf16.msra.mxu0 %v1568_v35 }
  0x70   :  { %765 = vmatprep.subr.bf16.mxu0 %v1573_v36  ;;  %1050 = vmatpush2.bf16.msra.mxu1 %v1615_v0  ;;  %v859_v0 = vld [vmem:[%s2166_s4] sm:$0x3] }
  0x71   :  { %1051 = vmatprep.subr.bf16.mxu1 %v1620_v1 }
  0x73   :  { %766 = vmatpush2.bf16.msra.mxu0 %v1571_v37  ;;  %v131_v37 = vlaneseq }
  0x74   :  { %767 = vmatprep.subr.bf16.mxu0 %v1576_v38  ;;  %1052 = vmatpush2.bf16.msra.mxu1 %v1618_v2 }
  0x75   :  { %1053 = vmatprep.subr.bf16.mxu1 %v1623_v3  ;;  %v132_v38 = vshrl.u32 %v131_v37, 7 }
  0x77   :  { %768 = vmatpush2.bf16.msra.mxu0 %v1574_v39  ;;  %v133_v39 = vsub.s32 0, %v132_v38 }
  0x78   :  { %769 = vmatprep.subr.bf16.mxu0 %v1579_v40  ;;  %1054 = vmatpush2.bf16.msra.mxu1 %v1621_v4  ;;  %v129_v40 = vld [vmem:[%s2165_s2] sm:$0x3] }
  0x79   :  { %1055 = vmatprep.subr.bf16.mxu1 %v1626_v5  ;;  %v864_v1 = vrot.slane %v859_v0, %v133_v39 }
  0x7b   :  { %770 = vmatpush2.bf16.msra.mxu0 %v1577_v41  ;;  %v137_v41 = vsub.s32 1, %v132_v38 }
  0x7c   :  { %771 = vmatprep.subr.bf16.mxu0 %v1585_v42  ;;  %1056 = vmatpush2.bf16.msra.mxu1 %v1624_v6  ;;  %v134_v42 = vrot.slane %v129_v40, %v133_v39 }
  0x7d   :  { %1057 = vmatprep.subr.bf16.mxu1 %v1629_v7  ;;  %v868_v2 = vrot.slane %v859_v0, %v137_v41 }
  0x7f   :  { %772 = vmatpush2.bf16.msra.mxu0 %v1583_v43  ;;  %v138_v43 = vrot.slane %v129_v40, %v137_v41 }
  0x80   :  { %1058 = vmatpush2.bf16.msra.mxu1 %v1627_v8  ;;  %1411 = vmatprep.subr.bf16.mxu0 %v1636_v13 }
  0x81   :  { %1059 = vmatprep.subr.bf16.mxu1 %v1632_v9 }
  0x82   :  { %774 = vmatmul.mubr.bf16.vlgmr.msra.gmra.mxu0 %v1260_v44 }
  0x83   :  { %1412 = vmatpush3.bf16.msra.mxu0 %v1637_v14  ;;  %v1394_v14 = vld [vmem:[%s2167_s6] ss:$0 sm:$0xff] }
  0x84   :  { %1060 = vmatpush2.bf16.msra.mxu1 %v1630_v10  ;;  %1413 = vmatprep.subr.bf16.mxu0 %v1638_v15 }
  0x85   :  { %1061 = vmatprep.subr.bf16.mxu1 %v1635_v11 }
  0x87   :  { %1414 = vmatpush3.bf16.msra.mxu0 %v1639_v16 }
  0x88   :  { %1062 = vmatpush2.bf16.msra.mxu1 %v1633_v12  ;;  %1415 = vmatprep.subr.bf16.mxu0 %v1640_v17 }
  0x8b   :  { %1416 = vmatpush3.bf16.msra.mxu0 %v1641_v18 }
  0x8c   :  { %1417 = vmatprep.subr.bf16.mxu0 %v1642_v19 }
  0x8f   :  { %1418 = vmatpush3.bf16.msra.mxu0 %v1643_v20 }
  0x90   :  { %1419 = vmatprep.subr.bf16.mxu0 %v1644_v21 }
  0x93   :  { %1420 = vmatpush3.bf16.msra.mxu0 %v1645_v22 }
  0x94   :  { %1421 = vmatprep.subr.bf16.mxu0 %v1646_v23 }
  0x97   :  { %1422 = vmatpush3.bf16.msra.mxu0 %v1647_v24 }
  0x98   :  { %1423 = vmatprep.subr.bf16.mxu0 %v1648_v60 }
  0x9b   :  { %1424 = vmatpush3.bf16.msra.mxu0 %v1649_v61 }
  0x9c   :  { %1425 = vmatprep.subr.bf16.mxu0 %v1650_v62 }
  0x9f   :  { %1426 = vmatpush3.bf16.msra.mxu0 %v1651_v63 }
 0x102   :  { %v693_v25 = vpop.f32.mrf.mxu0 }
 0x103   :  { %v734_v27 = vpop.f32.mrf.mxu1  ;;  %v694_v44 = vadd.f32 %v693_v25, %v134_v42 }
 0x104   :  { %v695_v26 = vpop.f32.mrf.mxu0 }
 0x105   :  { %v736_v29 = vpop.f32.mrf.mxu1  ;;  %v696_v45 = vadd.f32 %v695_v26, %v138_v43  ;;  %v735_v46 = vadd.f32 %v734_v27, %v694_v44 }
 0x106   :  { %v697_v28 = vpop.f32.mrf.mxu0 }
 0x107   :  { %v738_v31 = vpop.f32.mrf.mxu1  ;;  %v737_v48 = vadd.f32 %v736_v29, %v696_v45 }
 0x108   :  { %v698_v30 = vpop.f32.mrf.mxu0 }
 0x109   :  { %v739_v32 = vpop.f32.mrf.mxu1 }
 0x10b   :  { %v816_v33 = vpop.f32.mrf.mxu1 }
 0x10d   :  { %v818_v34 = vpop.f32.mrf.mxu1 }
 0x10f   :  { %v820_v35 = vpop.f32.mrf.mxu1 }
 0x111   :  { %v821_v36 = vpop.f32.mrf.mxu1 }
 0x142   :  { %v775_v47 = vpop.f32.mrf.mxu0 }
 0x143   :  { %v776_v49 = vadd.f32 %v775_v47, %v735_v46 }
 0x144   :  { %v777_v50 = vpop.f32.mrf.mxu0 }
 0x145   :  { %v817_v51 = vadd.f32 %v816_v33, %v776_v49  ;;  %v778_v52 = vadd.f32 %v777_v50, %v737_v48 }
 0x146   :  { %v779_v53 = vpop.f32.mrf.mxu0 }
 0x147   :  { %v819_v54 = vadd.f32 %v818_v34, %v778_v52  ;;  %v823_v55 = vmax.f32 %v817_v51, 0.0 }
 0x148   :  { %v780_v56 = vpop.f32.mrf.mxu0 }
 0x149   :  { %v824_v57 = vmax.f32 %v819_v54, 0.0  ;;  %v825_v59 = vpack.c.bf16 %v823_v55, %v823_v55 }
 0x14b   :  { %v826_v58 = vpack.c.bf16 %v824_v57, %v824_v57 }
 0x14d   :  { %1063 = vmatprep.mubr.bf16.mxu1 %v826_v58 }
 0x14e   :  { %1064 = vmatmul.mubr.bf16.vlgmr.msra.gmra.mxu1 %v825_v59 }
 0x20e   :  { %v1065_v3 = vpop.f32.mrf.mxu1 }
 0x20f   :  { %v1066_v4 = vadd.f32 %v1065_v3, %v864_v1 }
 0x210   :  { %v1067_v5 = vpop.f32.mrf.mxu1 }
 0x211   :  { %v1068_v6 = vadd.f32 %v1067_v5, %v868_v2  ;;  %v1072_v7 = vmax.f32 %v1066_v4, 0.0 }
 0x212   :  { %v1069_v8 = vpop.f32.mrf.mxu1 }
 0x213   :  { %v1073_v9 = vmax.f32 %v1068_v6, 0.0  ;;  %v1074_v12 = vpack.c.bf16 %v1072_v7, %v1072_v7 }
 0x214   :  { %v1070_v10 = vpop.f32.mrf.mxu1 }
 0x215   :  { %v1075_v11 = vpack.c.bf16 %v1073_v9, %v1073_v9 }
 0x217   :  { %1243 = vmatprep.mubr.bf16.mxu0 %v1075_v11 }
 0x218   :  { %1244 = vmatmul.mubr.bf16.vlgmr.msra.gmra.mxu0 %v1074_v12 }
 0x2d8   :  { %v1427_v13 = vpop.f32.mrf.mxu0 }
 0x2da   :  { %v1428_v15 = vpop.f32.mrf.mxu0 }
 0x2db   :  { %v1429_v16 = vadd.f32 %v1428_v15, %v1427_v13 }
 0x2dc   :  { %v1430_v17 = vpop.f32.mrf.mxu0 }
 0x2dd   :  { %v1246_v18 = vadd.f32 %v1429_v16, %v1394_v14 }
 0x2de   :  { %v1431_v19 = vpop.f32.mrf.mxu0 }
 0x2df   :  { %1251 = vst [vmem:[%s2168_s7] sm:$0xff] %v1246_v18 }

</bundles_post_ra>
